<compile_context>
chip_gen: v5e
topology: v5e:2x2
jax: 0.10.0
libtpu: 0.0.40
codegen_flags: <defaults>
</compile_context>

<pallas_src>
import jax
import jax.numpy as jnp
from jax.experimental import pallas as pl
from jax.experimental.pallas import tpu as pltpu

INPUT_DIMS = 27
HIDDEN_DIMS = 16
LATENT_DIMS = 8
LEAKY_SLOPE = 0.01            # PyTorch F.leaky_relu default negative_slope
_DEFAULT_BATCH_TILE = 4096    # rows per grid step (multiple of 8)


def _vae_kernel(
    x_ref, eps_ref,
    w1e_ref, b1e_ref,          # encoder.linear1 : (27, 16), (1, 16)
    wmu_ref, bmu_ref,          # encoder.mu      : (16, 8),  (1, 8)
    wlv_ref, blv_ref,          # encoder.log_var : (16, 8),  (1, 8)
    w1d_ref, b1d_ref,          # decoder.linear1 : (8, 16),  (1, 16)
    w2d_ref, b2d_ref,          # decoder.linear2 : (16, 27), (1, 27)
    recon_ref, mu_ref, lv_ref,
):
    # Batch-major tile: rows = samples (sublanes), cols = features (lanes).
    # Upcast to f32 right after load (no-op for f32 I/O; keeps v5e elementwise
    # path in f32 when bf16 I/O is used).
    x = x_ref[...].astype(jnp.float32)          # (tb, 27)
    eps = eps_ref[...].astype(jnp.float32)      # (tb, 8)

    # ----- Variational encoder -----
    h = jnp.dot(x, w1e_ref[...], preferred_element_type=jnp.float32) + b1e_ref[...]
    h = jnp.maximum(h, 0.0)                     # ReLU                (tb, 16)
    mu = jnp.dot(h, wmu_ref[...], preferred_element_type=jnp.float32) + bmu_ref[...]
    log_var = jnp.dot(h, wlv_ref[...], preferred_element_type=jnp.float32) + blv_ref[...]

    # ----- Reparameterize: z = mu + eps * exp(0.5 * log_var) -----
    z = mu + eps * jnp.exp(0.5 * log_var)       # (tb, 8)

    # ----- Decoder -----
    hd = jnp.dot(z, w1d_ref[...], preferred_element_type=jnp.float32) + b1d_ref[...]
    hd = jnp.where(hd > 0.0, hd, LEAKY_SLOPE * hd)   # LeakyReLU      (tb, 16)
    recon = jnp.dot(hd, w2d_ref[...], preferred_element_type=jnp.float32) + b2d_ref[...]

    recon_ref[...] = recon.astype(recon_ref.dtype)   # (tb, 27)
    mu_ref[...] = mu.astype(mu_ref.dtype)            # (tb, 8)
    lv_ref[...] = log_var.astype(lv_ref.dtype)       # (tb, 8)


def _choose_batch_tile(batch, batch_tile):
    """Pick the per-step row tile.

    - Large batches: use `batch_tile` rows per step.
    - Medium batches (>= 256): split into (at least) 2 steps so the "parallel"
      grid axis spans both v7x TensorCores.
    - Tiny batches: one block equal to the full batch (no tiling overhead).
    """
    if batch >= 2 * batch_tile:
        return batch_tile
    if batch >= 256:
        return pl.cdiv(pl.cdiv(batch, 2), 8) * 8   # >= 2 grid steps, sublane-aligned
    return batch


def vae_forward(x, eps, params, *, batch_tile=_DEFAULT_BATCH_TILE,
                io_dtype=jnp.float32):
    """x: (B, 1, INPUT_DIMS).  eps: (B, LATENT_DIMS).
    Returns (recon (B, 1, 27), mu (B, latent), log_var (B, latent))."""
    B = x.shape[0]
    # torch.flatten(x, start_dim=1): free row-major reshape, no transpose, no pad.
    x2d = x.reshape(B, INPUT_DIMS).astype(io_dtype)
    eps2d = eps.astype(io_dtype)

    tb = _choose_batch_tile(B, batch_tile)
    grid = (pl.cdiv(B, tb),)   # ragged tail handled by Pallas boundary padding

    def stream_spec(feat):                       # batch-streamed arrays
        return pl.BlockSpec((tb, feat), lambda i: (i, 0))

    def resident_spec(arr):                      # VMEM-resident weights/biases
        return pl.BlockSpec(arr.shape, lambda i: (0, 0))

    w1e, b1e = params["w1e"], params["b1e"]
    wmu, bmu = params["wmu"], params["bmu"]
    wlv, blv = params["wlv"], params["blv"]
    w1d, b1d = params["w1d"], params["b1d"]
    w2d, b2d = params["w2d"], params["b2d"]
    weights = (w1e, b1e, wmu, bmu, wlv, blv, w1d, b1d, w2d, b2d)

    itemsize = jnp.dtype(io_dtype).itemsize
    flops = 2 * B * (INPUT_DIMS * HIDDEN_DIMS          # encoder.linear1
                     + 2 * HIDDEN_DIMS * LATENT_DIMS   # mu + log_var heads
                     + LATENT_DIMS * HIDDEN_DIMS       # decoder.linear1
                     + HIDDEN_DIMS * INPUT_DIMS)       # decoder.linear2
    bytes_accessed = (itemsize * B * (2 * INPUT_DIMS + 3 * LATENT_DIMS)
                      + sum(int(w.size) * w.dtype.itemsize for w in weights))
    cost = pl.CostEstimate(flops=flops,
                           transcendentals=B * LATENT_DIMS,
                           bytes_accessed=bytes_accessed)

    recon2d, mu, log_var = pl.pallas_call(
        _vae_kernel,
        out_shape=(
            jax.ShapeDtypeStruct((B, INPUT_DIMS), io_dtype),
            jax.ShapeDtypeStruct((B, LATENT_DIMS), io_dtype),
            jax.ShapeDtypeStruct((B, LATENT_DIMS), io_dtype),
        ),
        grid=grid,
        in_specs=[
            stream_spec(INPUT_DIMS),             # x (batch-major, no transpose)
            stream_spec(LATENT_DIMS),            # eps
            resident_spec(w1e), resident_spec(b1e),
            resident_spec(wmu), resident_spec(bmu),
            resident_spec(wlv), resident_spec(blv),
            resident_spec(w1d), resident_spec(b1d),
            resident_spec(w2d), resident_spec(b2d),
        ],
        out_specs=(
            stream_spec(INPUT_DIMS),             # recon
            stream_spec(LATENT_DIMS),            # mu
            stream_spec(LATENT_DIMS),            # log_var
        ),
        compiler_params=pltpu.CompilerParams(
            dimension_semantics=("parallel",),   # megacore: batch tiles split across TCs
            vmem_limit_bytes=48 * 1024 * 1024,   # < v7x 64 MiB physical, > default scoped
        ),
        cost_estimate=cost,
    )(x2d, eps2d, *weights)

    # Decoder.forward: z.reshape((-1, 1, 27))  (free reshape, no HBM pass)
    return recon2d.reshape(-1, 1, INPUT_DIMS), mu, log_var


def init_params(key):
    """Parameter init mirroring nn.Linear, stored in matmul-friendly layout:
    weights (in, out) so the kernel computes x @ W + b; biases (1, out)."""
    def linear(k, fan_in, fan_out):
        kw, kb = jax.random.split(k)
        bound = float(fan_in) ** -0.5
        w = jax.random.uniform(kw, (fan_in, fan_out), jnp.float32, -bound, bound)
        b = jax.random.uniform(kb, (1, fan_out), jnp.float32, -bound, bound)
        return w, b

    k1, k2, k3, k4, k5 = jax.random.split(key, 5)
    w1e, b1e = linear(k1, INPUT_DIMS, HIDDEN_DIMS)     # encoder.linear1
    wmu, bmu = linear(k2, HIDDEN_DIMS, LATENT_DIMS)    # encoder.mu
    wlv, blv = linear(k3, HIDDEN_DIMS, LATENT_DIMS)    # encoder.log_var
    w1d, b1d = linear(k4, LATENT_DIMS, HIDDEN_DIMS)    # decoder.linear1
    w2d, b2d = linear(k5, HIDDEN_DIMS, INPUT_DIMS)     # decoder.linear2
    return dict(w1e=w1e, b1e=b1e, wmu=wmu, bmu=bmu, wlv=wlv, blv=blv,
                w1d=w1d, b1d=b1d, w2d=w2d, b2d=b2d)


def _reference_forward(x, eps, p):
    """Pure-JAX reference for correctness checking."""
    B = x.shape[0]
    x2d = x.reshape(B, INPUT_DIMS)
    h = jnp.maximum(x2d @ p["w1e"] + p["b1e"], 0.0)
    mu = h @ p["wmu"] + p["bmu"]
    log_var = h @ p["wlv"] + p["blv"]
    z = mu + eps * jnp.exp(0.5 * log_var)
    hd = z @ p["w1d"] + p["b1d"]
    hd = jnp.where(hd > 0, hd, LEAKY_SLOPE * hd)
    recon = hd @ p["w2d"] + p["b2d"]
    return recon.reshape(-1, 1, INPUT_DIMS), mu, log_var


if __name__ == "__main__":
    key = jax.random.PRNGKey(0)
    k_params, k_x, k_eps, k_x2, k_eps2 = jax.random.split(key, 5)
    params = init_params(k_params)

    # --- small batch: single full-array block ---
    B = 4
    x = jax.random.normal(k_x, (B, 1, INPUT_DIMS), jnp.float32)
    eps = jax.random.normal(k_eps, (B, LATENT_DIMS), jnp.float32)
    recon, mu, log_var = vae_forward(x, eps, params)
    jax.block_until_ready((recon, mu, log_var))

    r_ref, mu_ref, lv_ref = _reference_forward(x, eps, params)
    assert recon.shape == (B, 1, INPUT_DIMS)
    assert mu.shape == (B, LATENT_DIMS) and log_var.shape == (B, LATENT_DIMS)
    assert jnp.allclose(recon, r_ref, atol=1e-5)
    assert jnp.allclose(mu, mu_ref, atol=1e-5)
    assert jnp.allclose(log_var, lv_ref, atol=1e-5)

    # --- ragged batch: 2 grid steps (both v7x TCs), non-divisible tail,
    #     exercises Pallas boundary-block padding (no host-side jnp.pad) ---
    B2 = 300
    x2 = jax.random.normal(k_x2, (B2, 1, INPUT_DIMS), jnp.float32)
    eps2 = jax.random.normal(k_eps2, (B2, LATENT_DIMS), jnp.float32)
    recon2, mu2, lv2 = vae_forward(x2, eps2, params)
    jax.block_until_ready((recon2, mu2, lv2))

    r2_ref, mu2_ref, lv2_ref = _reference_forward(x2, eps2, params)
    assert jnp.allclose(recon2, r2_ref, atol=1e-5)
    assert jnp.allclose(mu2, mu2_ref, atol=1e-5)
    assert jnp.allclose(lv2, lv2_ref, atol=1e-5)

    print("KERNEL_OK")
</pallas_src>

<mosaic_0001>
module attributes {stable_mosaic.version = 11 : i64} {
  func.func @_vae_kernel(%arg0: i32, %arg1: memref<4x27xf32, #tpu.memory_space<vmem>>, %arg2: memref<4x8xf32, #tpu.memory_space<vmem>>, %arg3: memref<27x16xf32, #tpu.memory_space<vmem>>, %arg4: memref<1x16xf32, #tpu.memory_space<vmem>>, %arg5: memref<16x8xf32, #tpu.memory_space<vmem>>, %arg6: memref<1x8xf32, #tpu.memory_space<vmem>>, %arg7: memref<16x8xf32, #tpu.memory_space<vmem>>, %arg8: memref<1x8xf32, #tpu.memory_space<vmem>>, %arg9: memref<8x16xf32, #tpu.memory_space<vmem>>, %arg10: memref<1x16xf32, #tpu.memory_space<vmem>>, %arg11: memref<16x27xf32, #tpu.memory_space<vmem>>, %arg12: memref<1x27xf32, #tpu.memory_space<vmem>>, %arg13: memref<4x27xf32, #tpu.memory_space<vmem>>, %arg14: memref<4x8xf32, #tpu.memory_space<vmem>>, %arg15: memref<4x8xf32, #tpu.memory_space<vmem>>) attributes {dimension_semantics = [#tpu.dimension_semantics<parallel>], iteration_bounds = array<i64: 1>, scalar_prefetch = 0 : i64, scratch_operands = 0 : i64, tpu.core_type = #tpu.core_type<tc>, window_params = [{transform_indices = @transform_0, window_bounds = array<i64: 4, 27>}, {transform_indices = @transform_1, window_bounds = array<i64: 4, 8>}, {pipeline_mode = #tpu.pipeline_mode<synchronous>, transform_indices = @transform_2, window_bounds = array<i64: 27, 16>}, {pipeline_mode = #tpu.pipeline_mode<synchronous>, transform_indices = @transform_3, window_bounds = array<i64: 1, 16>}, {pipeline_mode = #tpu.pipeline_mode<synchronous>, transform_indices = @transform_4, window_bounds = array<i64: 16, 8>}, {pipeline_mode = #tpu.pipeline_mode<synchronous>, transform_indices = @transform_5, window_bounds = array<i64: 1, 8>}, {pipeline_mode = #tpu.pipeline_mode<synchronous>, transform_indices = @transform_6, window_bounds = array<i64: 16, 8>}, {pipeline_mode = #tpu.pipeline_mode<synchronous>, transform_indices = @transform_7, window_bounds = array<i64: 1, 8>}, {pipeline_mode = #tpu.pipeline_mode<synchronous>, transform_indices = @transform_8, window_bounds = array<i64: 8, 16>}, {pipeline_mode = #tpu.pipeline_mode<synchronous>, transform_indices = @transform_9, window_bounds = array<i64: 1, 16>}, {pipeline_mode = #tpu.pipeline_mode<synchronous>, transform_indices = @transform_10, window_bounds = array<i64: 16, 27>}, {pipeline_mode = #tpu.pipeline_mode<synchronous>, transform_indices = @transform_11, window_bounds = array<i64: 1, 27>}, {transform_indices = @transform_12, window_bounds = array<i64: 4, 27>}, {transform_indices = @transform_13, window_bounds = array<i64: 4, 8>}, {transform_indices = @transform_14, window_bounds = array<i64: 4, 8>}]} {
    %c0 = arith.constant 0 : index
    %c0_0 = arith.constant 0 : index
    %0 = vector.load %arg1[%c0, %c0_0] : memref<4x27xf32, #tpu.memory_space<vmem>>, vector<4x27xf32>
    %c0_1 = arith.constant 0 : index
    %c0_2 = arith.constant 0 : index
    %1 = vector.load %arg2[%c0_1, %c0_2] : memref<4x8xf32, #tpu.memory_space<vmem>>, vector<4x8xf32>
    %c0_3 = arith.constant 0 : index
    %c0_4 = arith.constant 0 : index
    %2 = vector.load %arg3[%c0_3, %c0_4] : memref<27x16xf32, #tpu.memory_space<vmem>>, vector<27x16xf32>
    %cst = arith.constant dense<0.000000e+00> : vector<4x16xf32>
    %3 = tpu.matmul %0, %2, %cst {dimension_numbers = #tpu.dot_dimension_numbers<[1], [0], [0], [1], [0, 0, 1, 1], [], []>} : vector<4x27xf32>, vector<27x16xf32>, vector<4x16xf32> -> vector<4x16xf32>
    %c0_5 = arith.constant 0 : index
    %c0_6 = arith.constant 0 : index
    %4 = vector.load %arg4[%c0_5, %c0_6] : memref<1x16xf32, #tpu.memory_space<vmem>>, vector<1x16xf32>
    %5 = vector.broadcast %4 : vector<1x16xf32> to vector<4x16xf32>
    %6 = arith.addf %3, %5 : vector<4x16xf32>
    %cst_7 = arith.constant 0.000000e+00 : f32
    %7 = vector.broadcast %cst_7 : f32 to vector<4x16xf32>
    %8 = arith.maximumf %6, %7 : vector<4x16xf32>
    %c0_8 = arith.constant 0 : index
    %c0_9 = arith.constant 0 : index
    %9 = vector.load %arg5[%c0_8, %c0_9] : memref<16x8xf32, #tpu.memory_space<vmem>>, vector<16x8xf32>
    %cst_10 = arith.constant dense<0.000000e+00> : vector<4x8xf32>
    %10 = tpu.matmul %8, %9, %cst_10 {dimension_numbers = #tpu.dot_dimension_numbers<[1], [0], [0], [1], [0, 0, 1, 1], [], []>} : vector<4x16xf32>, vector<16x8xf32>, vector<4x8xf32> -> vector<4x8xf32>
    %c0_11 = arith.constant 0 : index
    %c0_12 = arith.constant 0 : index
    %11 = vector.load %arg6[%c0_11, %c0_12] : memref<1x8xf32, #tpu.memory_space<vmem>>, vector<1x8xf32>
    %12 = vector.broadcast %11 : vector<1x8xf32> to vector<4x8xf32>
    %13 = arith.addf %10, %12 : vector<4x8xf32>
    %c0_13 = arith.constant 0 : index
    %c0_14 = arith.constant 0 : index
    %14 = vector.load %arg7[%c0_13, %c0_14] : memref<16x8xf32, #tpu.memory_space<vmem>>, vector<16x8xf32>
    %cst_15 = arith.constant dense<0.000000e+00> : vector<4x8xf32>
    %15 = tpu.matmul %8, %14, %cst_15 {dimension_numbers = #tpu.dot_dimension_numbers<[1], [0], [0], [1], [0, 0, 1, 1], [], []>} : vector<4x16xf32>, vector<16x8xf32>, vector<4x8xf32> -> vector<4x8xf32>
    %c0_16 = arith.constant 0 : index
    %c0_17 = arith.constant 0 : index
    %16 = vector.load %arg8[%c0_16, %c0_17] : memref<1x8xf32, #tpu.memory_space<vmem>>, vector<1x8xf32>
    %17 = vector.broadcast %16 : vector<1x8xf32> to vector<4x8xf32>
    %18 = arith.addf %15, %17 : vector<4x8xf32>
    %cst_18 = arith.constant 5.000000e-01 : f32
    %19 = vector.broadcast %cst_18 : f32 to vector<4x8xf32>
    %20 = arith.mulf %19, %18 : vector<4x8xf32>
    %21 = math.exp %20 : vector<4x8xf32>
    %22 = arith.mulf %1, %21 : vector<4x8xf32>
    %23 = arith.addf %13, %22 : vector<4x8xf32>
    %c0_19 = arith.constant 0 : index
    %c0_20 = arith.constant 0 : index
    %24 = vector.load %arg9[%c0_19, %c0_20] : memref<8x16xf32, #tpu.memory_space<vmem>>, vector<8x16xf32>
    %cst_21 = arith.constant dense<0.000000e+00> : vector<4x16xf32>
    %25 = tpu.matmul %23, %24, %cst_21 {dimension_numbers = #tpu.dot_dimension_numbers<[1], [0], [0], [1], [0, 0, 1, 1], [], []>} : vector<4x8xf32>, vector<8x16xf32>, vector<4x16xf32> -> vector<4x16xf32>
    %c0_22 = arith.constant 0 : index
    %c0_23 = arith.constant 0 : index
    %26 = vector.load %arg10[%c0_22, %c0_23] : memref<1x16xf32, #tpu.memory_space<vmem>>, vector<1x16xf32>
    %27 = vector.broadcast %26 : vector<1x16xf32> to vector<4x16xf32>
    %28 = arith.addf %25, %27 : vector<4x16xf32>
    %cst_24 = arith.constant 0.000000e+00 : f32
    %29 = vector.broadcast %cst_24 : f32 to vector<4x16xf32>
    %30 = arith.cmpf ogt, %28, %29 : vector<4x16xf32>
    %cst_25 = arith.constant 0.00999999977 : f32
    %31 = vector.broadcast %cst_25 : f32 to vector<4x16xf32>
    %32 = arith.mulf %31, %28 : vector<4x16xf32>
    %33 = arith.select %30, %28, %32 : vector<4x16xi1>, vector<4x16xf32>
    %c0_26 = arith.constant 0 : index
    %c0_27 = arith.constant 0 : index
    %34 = vector.load %arg11[%c0_26, %c0_27] : memref<16x27xf32, #tpu.memory_space<vmem>>, vector<16x27xf32>
    %cst_28 = arith.constant dense<0.000000e+00> : vector<4x27xf32>
    %35 = tpu.matmul %33, %34, %cst_28 {dimension_numbers = #tpu.dot_dimension_numbers<[1], [0], [0], [1], [0, 0, 1, 1], [], []>} : vector<4x16xf32>, vector<16x27xf32>, vector<4x27xf32> -> vector<4x27xf32>
    %c0_29 = arith.constant 0 : index
    %c0_30 = arith.constant 0 : index
    %36 = vector.load %arg12[%c0_29, %c0_30] : memref<1x27xf32, #tpu.memory_space<vmem>>, vector<1x27xf32>
    %37 = vector.broadcast %36 : vector<1x27xf32> to vector<4x27xf32>
    %38 = arith.addf %35, %37 : vector<4x27xf32>
    %c0_31 = arith.constant 0 : index
    %c0_32 = arith.constant 0 : index
    %39 = vector.load %arg13[%c0_31, %c0_32] : memref<4x27xf32, #tpu.memory_space<vmem>>, vector<4x27xf32>
    tpu.vector_store %arg13[%c0_31, %c0_32], %38 {strides = array<i32>} : memref<4x27xf32, #tpu.memory_space<vmem>>, vector<4x27xf32>,
    %c0_33 = arith.constant 0 : index
    %c0_34 = arith.constant 0 : index
    %40 = vector.load %arg14[%c0_33, %c0_34] : memref<4x8xf32, #tpu.memory_space<vmem>>, vector<4x8xf32>
    tpu.vector_store %arg14[%c0_33, %c0_34], %13 {strides = array<i32>} : memref<4x8xf32, #tpu.memory_space<vmem>>, vector<4x8xf32>,
    %c0_35 = arith.constant 0 : index
    %c0_36 = arith.constant 0 : index
    %41 = vector.load %arg15[%c0_35, %c0_36] : memref<4x8xf32, #tpu.memory_space<vmem>>, vector<4x8xf32>
    tpu.vector_store %arg15[%c0_35, %c0_36], %18 {strides = array<i32>} : memref<4x8xf32, #tpu.memory_space<vmem>>, vector<4x8xf32>,
    return
  }
  func.func @transform_0(%arg0: i32) -> (i32, i32) {
    %c0_i32 = arith.constant 0 : i32
    %c0_i32_0 = arith.constant 0 : i32
    return %arg0, %c0_i32 : i32, i32
  }
  func.func @transform_1(%arg0: i32) -> (i32, i32) {
    %c0_i32 = arith.constant 0 : i32
    %c0_i32_0 = arith.constant 0 : i32
    return %arg0, %c0_i32 : i32, i32
  }
  func.func @transform_2(%arg0: i32) -> (i32, i32) {
    %c0_i32 = arith.constant 0 : i32
    %c0_i32_0 = arith.constant 0 : i32
    %c0_i32_1 = arith.constant 0 : i32
    return %c0_i32, %c0_i32_0 : i32, i32
  }
  func.func @transform_3(%arg0: i32) -> (i32, i32) {
    %c0_i32 = arith.constant 0 : i32
    %c0_i32_0 = arith.constant 0 : i32
    %c0_i32_1 = arith.constant 0 : i32
    return %c0_i32, %c0_i32_0 : i32, i32
  }
  func.func @transform_4(%arg0: i32) -> (i32, i32) {
    %c0_i32 = arith.constant 0 : i32
    %c0_i32_0 = arith.constant 0 : i32
    %c0_i32_1 = arith.constant 0 : i32
    return %c0_i32, %c0_i32_0 : i32, i32
  }
  func.func @transform_5(%arg0: i32) -> (i32, i32) {
    %c0_i32 = arith.constant 0 : i32
    %c0_i32_0 = arith.constant 0 : i32
    %c0_i32_1 = arith.constant 0 : i32
    return %c0_i32, %c0_i32_0 : i32, i32
  }
  func.func @transform_6(%arg0: i32) -> (i32, i32) {
    %c0_i32 = arith.constant 0 : i32
    %c0_i32_0 = arith.constant 0 : i32
    %c0_i32_1 = arith.constant 0 : i32
    return %c0_i32, %c0_i32_0 : i32, i32
  }
  func.func @transform_7(%arg0: i32) -> (i32, i32) {
    %c0_i32 = arith.constant 0 : i32
    %c0_i32_0 = arith.constant 0 : i32
    %c0_i32_1 = arith.constant 0 : i32
    return %c0_i32, %c0_i32_0 : i32, i32
  }
  func.func @transform_8(%arg0: i32) -> (i32, i32) {
    %c0_i32 = arith.constant 0 : i32
    %c0_i32_0 = arith.constant 0 : i32
    %c0_i32_1 = arith.constant 0 : i32
    return %c0_i32, %c0_i32_0 : i32, i32
  }
  func.func @transform_9(%arg0: i32) -> (i32, i32) {
    %c0_i32 = arith.constant 0 : i32
    %c0_i32_0 = arith.constant 0 : i32
    %c0_i32_1 = arith.constant 0 : i32
    return %c0_i32, %c0_i32_0 : i32, i32
  }
  func.func @transform_10(%arg0: i32) -> (i32, i32) {
    %c0_i32 = arith.constant 0 : i32
    %c0_i32_0 = arith.constant 0 : i32
    %c0_i32_1 = arith.constant 0 : i32
    return %c0_i32, %c0_i32_0 : i32, i32
  }
  func.func @transform_11(%arg0: i32) -> (i32, i32) {
    %c0_i32 = arith.constant 0 : i32
    %c0_i32_0 = arith.constant 0 : i32
    %c0_i32_1 = arith.constant 0 : i32
    return %c0_i32, %c0_i32_0 : i32, i32
  }
  func.func @transform_12(%arg0: i32) -> (i32, i32) {
    %c0_i32 = arith.constant 0 : i32
    %c0_i32_0 = arith.constant 0 : i32
    return %arg0, %c0_i32 : i32, i32
  }
  func.func @transform_13(%arg0: i32) -> (i32, i32) {
    %c0_i32 = arith.constant 0 : i32
    %c0_i32_0 = arith.constant 0 : i32
    return %arg0, %c0_i32 : i32, i32
  }
  func.func @transform_14(%arg0: i32) -> (i32, i32) {
    %c0_i32 = arith.constant 0 : i32
    %c0_i32_0 = arith.constant 0 : i32
    return %arg0, %c0_i32 : i32, i32
  }
}

</mosaic_0001>

<bundles_post_ra>
// kernel: tpu_custom_call.1
= control target key start
LH: loop header
LB: loop body
LE: loop exit
PB: predicated region body
PF: predicated region fallthrough
CT: control target
= control target key end

     0   :  { %20 = vsyncpa [#allocation3], 0  ;;  %vm60_vm0 = vcmask 1042432   ;;  %s495_s0 = inlined_call_operand.vmem [shape: f32[4,27], index: 0, kind: input, shape index: {}]   ;;  %s496_s1 = inlined_call_operand.vmem [shape: f32[4,8], index: 1, kind: input, shape index: {}]   ;;  %s497_s2 = inlined_call_operand.vmem [shape: f32[27,16], index: 2, kind: input, shape index: {}]   ;;  %s498_s3 = inlined_call_operand.vmem [shape: f32[1,16], index: 3, kind: input, shape index: {}]   ;;  %s499_s4 = inlined_call_operand.vmem [shape: f32[16,8], index: 4, kind: input, shape index: {}]   ;;  %s500_s5 = inlined_call_operand.vmem [shape: f32[1,8], index: 5, kind: input, shape index: {}]   ;;  %s501_s6 = inlined_call_operand.vmem [shape: f32[16,8], index: 6, kind: input, shape index: {}]   ;;  %s502_s7 = inlined_call_operand.vmem [shape: f32[1,8], index: 7, kind: input, shape index: {}]   ;;  %s503_s8 = inlined_call_operand.vmem [shape: f32[8,16], index: 8, kind: input, shape index: {}]   ;;  %s504_s9 = inlined_call_operand.vmem [shape: f32[1,16], index: 9, kind: input, shape index: {}]   ;;  %s505_s10 = inlined_call_operand.vmem [shape: f32[16,27], index: 10, kind: input, shape index: {}]   ;;  %s506_s11 = inlined_call_operand.vmem [shape: f32[1,27], index: 11, kind: input, shape index: {}]   ;;  %s507_s12 = inlined_call_operand.hbm [shape: f32[4,27], index: 12, kind: output, shape index: {0}]   ;;  %s508_s13 = inlined_call_operand.hbm [shape: f32[4,8], index: 13, kind: output, shape index: {1}]   ;;  %s509_s14 = inlined_call_operand.hbm [shape: f32[4,8], index: 14, kind: output, shape index: {2}]  }
   0x1   :  { %v51_v0 = vld [vmem:[%s497_s2 + $0x18] sm:$0x7]  ;;  %v50_v1 = vld [vmem:[%s497_s2 + $0x10] sm:$0xff]  ;;  %v49_v2 = vld [vmem:[%s497_s2 + $0x8] sm:$0xff] }
   0x2   :  { %259 = vmatpush.msk.msra.mxu0 %vm60_vm0, %v51_v0 }
   0x4   :  { %77 = vmatpush.msra.mxu0 %v50_v1 }
   0x5   :  { %21 = vsyncpa [#allocation5], 0  ;;  %v48_v3 = vld [vmem:[%s497_s2] sm:$0xff]  ;;  %vm56_vm1 = vcmask 220160   ;;  %v86_v5 = vld [vmem:[%s499_s4 + $0x8] sm:$0xff]  ;;  %vm91_vm2 = vcmask 130048  }
   0x6   :  { %78 = vmatpush.msra.mxu0 %v49_v2  ;;  %v46_v4 = vld [vmem:[%s495_s0] sm:$0xf]  ;;  %v116_v6 = vld [vmem:[%s501_s6 + $0x8] sm:$0xff]  ;;  %109 = vmatpush.msra.mxu1 %v86_v5  ;;  %vm209_vm3 = vcmask 60416   ;;  %vm151_vm4 = vcmask 64512   ;;  %s230_s26 = sshll.u32 %s508_s13, 4  ;;  %s231_s26 = int_to_ptr.hbm [resolvable:$true] %s230_s26 }
   0x7   :  { %135 = vmatpush.msra.mxu2 %v116_v6  ;;  %v85_v7 = vld [vmem:[%s499_s4] sm:$0xff]  ;;  %v179_v14 = vld [vmem:[%s505_s10 + $0x8] sm:$0xff]  ;;  %s241_s28 = sshll.u32 %s509_s14, 4  ;;  %s353_s30 = smov [#allocation2]   ;;  %vm207_vm6 = vcmask 216064   ;;  %s242_s28 = int_to_ptr.hbm [resolvable:$true] %s241_s28 }
   0x8   :  { %79 = vmatpush.msra.mxu0 %v48_v3  ;;  %v115_v8 = vld [vmem:[%s501_s6] sm:$0xff]  ;;  %110 = vmatpush.msra.mxu1 %v85_v7  ;;  %s217_s15 = sshll.u32 %s353_s30, 4  ;;  %s219_s6 = sshll.u32 %s507_s12, 4  ;;  %s218_s15 = int_to_ptr.vmem [resolvable:$true] %s217_s15  ;;  %s220_s6 = int_to_ptr.hbm [resolvable:$true] %s219_s6 }
   0x9   :  { %260 = vmatmul.msk.f32.vlgmr.msra.gmra.mxu0 %vm56_vm1, %v46_v4  ;;  %136 = vmatpush.msra.mxu2 %v115_v8  ;;  %v268_v9 = vld [vmem:[%s498_s3] ss:$0 sm:$0xff] }
   0xa   :  { %v146_v13 = vld [vmem:[%s503_s8] sm:$0xff] }
   0xb   :  { %170 = vmatpush.msra.mxu3 %v146_v13  ;;  %v269_v15 = vld [vmem:[%s500_s5] ss:$0 sm:$0xff] }
   0xc   :  { %v270_v18 = vld [vmem:[%s502_s7] ss:$0 sm:$0xff] }
   0xd   :  { %201 = vmatpush.msrb.mxu3 %v179_v14  ;;  %v47_v23 = vld [vmem:[%s496_s1] sm:$0xf]  ;;  %s351_s1 = smov [#allocation4]  }
   0xe   :  { %v178_v27 = vld [vmem:[%s505_s10] sm:$0xff]  ;;  %s228_s23 = sshll.u32 %s351_s1, 4  ;;  %s352_s10 = smov [#allocation6]   ;;  %s229_s23 = int_to_ptr.vmem [resolvable:$true] %s228_s23 }
   0xf   :  { %202 = vmatpush.msrb.mxu3 %v178_v27  ;;  %v271_v28 = vld [vmem:[%s504_s9] ss:$0 sm:$0xff]  ;;  %s239_s27 = sshll.u32 %s352_s10, 4  ;;  %s240_s27 = int_to_ptr.vmem [resolvable:$true] %s239_s27 }
  0x10   :  { %v272_v33 = vld [vmem:[%s506_s11] ss:$0 sm:$0xff] }
  0x86   :  { %v81_v10 = vpop.f32.mrf.mxu0 }
  0x87   :  { %v82_v11 = vadd.f32 %v268_v9, %v81_v10 }
  0x89   :  { %v84_v12 = vmax.f32 %v82_v11, 0.0 }
  0x8b   :  { %261 = vmatmul.msk.f32.vlgmr.msra.gmra.mxu1 %vm91_vm2, %v84_v12  ;;  %262 = vmatmul.msk.f32.vlgmr.msra.gmra.mxu2 %vm91_vm2, %v84_v12 }
 0x108   :  { %v112_v16 = vpop.f32.mrf.mxu1 }
 0x109   :  { %v113_v17 = vadd.f32 %v269_v15, %v112_v16 }
 0x10b   :  { %210 = vst.msk [vmem:[#allocation4] sm:$0xf] %vm209_vm3, %v113_v17 }
 0x10c   :  { %233 = dma.vmem_to_hbm [thread:$0]  %s229_s23, 64, %s231_s26, [#allocation5]  }
 0x10e   :  { %v138_v19 = vpop.f32.mrf.mxu2 }
 0x10f   :  { %v139_v20 = vadd.f32 %v270_v18, %v138_v19 }
 0x111   :  { %v141_v21 = vmul.f32 0.5, %v139_v20  ;;  %211 = vst.msk [vmem:[#allocation6] sm:$0xf] %vm209_vm3, %v139_v20 }
 0x112   :  { %244 = dma.vmem_to_hbm [thread:$0]  %s240_s27, 64, %s242_s28, [#allocation5]  }
 0x113   :  { %v142_v22 = vmul.f32 1.442695, %v141_v21 }
 0x115   :  { %273 = vpow2.f32 %v142_v22 }
 0x11b   :  { %v274_v24 = vpop.eup %273 }
 0x11c   :  { %v144_v25 = vmul.f32 %v274_v24, %v47_v23 }
 0x11e   :  { %v145_v26 = vadd.f32 %v144_v25, %v113_v17 }
 0x120   :  { %263 = vmatmul.msk.f32.vlgmr.msra.gmra.mxu3 %vm151_vm4, %v145_v26 }
 0x1a3   :  { %v172_v29 = vpop.f32.mrf.mxu3 }
 0x1a4   :  { %v173_v30 = vadd.f32 %v271_v28, %v172_v29 }
 0x1a6   :  { %vm175_vm5 = vcmp.gt.f32.partialorder %v173_v30, 0.0  ;;  %v176_v31 = vmul.f32 0.01, %v173_v30 }
 0x1a8   :  { %v177_v32 = vsel %vm175_vm5, %v173_v30, %v176_v31 }
 0x1a9   :  { %264 = vmatmul.msk.f32.vlgmr.msrb.gmra.mxu3 %vm91_vm2, %v177_v32 }
 0x22c   :  { %v204_v34 = vpop.f32.mrf.mxu3 }
 0x22d   :  { %v205_v35 = vadd.f32 %v272_v33, %v204_v34 }
 0x22f   :  { %208 = vst.msk [vmem:[#allocation2] sm:$0xf] %vm207_vm6, %v205_v35 }
 0x230   :  { %222 = dma.vmem_to_hbm [thread:$0]  %s218_s15, 64, %s220_s6, [#allocation3]  }
 0x231   :  { %347 = dma.done.wait [#allocation3], 64  }
 0x232   :  { %348 = vsyncadd [#allocation3], 4294967232 }
 0x233   :  { %349 = dma.done.wait [#allocation5], 128  }
 0x234   :  { %350 = vsyncadd [#allocation5], 4294967168 }
 0x235   :  { %257 = vsyncpa [#allocation3], 1 }
 0x236   :  { %258 = vsyncpa [#allocation5], 1 }

</bundles_post_ra>
